<compile_context>
chip_gen: v5e
topology: v5e:2x2
jax: 0.10.0
libtpu: 0.0.40
codegen_flags: <defaults>
</compile_context>

<pallas_src>
import functools

import jax
import jax.numpy as jnp
from jax.experimental import pallas as pl
from jax.experimental.pallas import tpu as pltpu

_LANE = 128          # lane width (last dim)
_SUBLANE = 16        # bf16 sublane packing granularity for the batch tile
_NEG_BIAS = -1e30    # padded final-layer logits -> exp ~= 0 (finite, not -inf)


def _round_up(x, m):
    return ((x + m - 1) // m) * m


def _is_multi_tc_chip():
    """True only for chips with >1 TensorCore sharing one grid (v7x)."""
    try:
        kind = jax.devices()[0].device_kind.lower()
        return "v7" in kind
    except Exception:
        return False


# ----------------------------------------------------------------------------
# Kernel
# ----------------------------------------------------------------------------
def _mlp_kernel(n_layers, compute_dtype, *refs):
    """refs = (x_ref, w0, b0, w1, b1, ..., w_{L-1}, b_{L-1}, o_ref)."""
    x_ref = refs[0]
    o_ref = refs[-1]
    param_refs = refs[1:-1]

    # f32 -> bf16 cast happens here on the VPU (hides under the MXU),
    # instead of a separate XLA convert pass over HBM in the wrapper.
    h = x_ref[...].astype(compute_dtype)

    for l in range(n_layers):
        w = param_refs[2 * l][...]                    # (in_pad, out_pad), bf16
        b = param_refs[2 * l + 1][...]                # (1, out_pad), f32
        acc = jnp.dot(h, w, preferred_element_type=jnp.float32) + b
        if l != n_layers - 1:
            acc = jnp.maximum(acc, 0.0)               # ReLU in f32 (v5e-safe)
            h = acc.astype(compute_dtype)             # bf16 operand for next matmul
        else:
            # Numerically stable softmax over dim=1 (feature axis), in f32.
            # Padded columns carry logit ~= -1e30 -> exp underflows to 0.
            m = jnp.max(acc, axis=1, keepdims=True)
            e = jnp.exp(acc - m)
            d = jnp.sum(e, axis=1, keepdims=True)
            r = pl.reciprocal(d, approx=True)         # EUP slot (free-ish)
            r = r * (2.0 - d * r)                     # one Newton step -> ~f32 accuracy
            h = e * r
    o_ref[...] = h.astype(o_ref.dtype)


# ----------------------------------------------------------------------------
# One-time parameter preparation (lane padding + dtype pre-cast)
# ----------------------------------------------------------------------------
def prepare_mlp_params(params, compute_dtype=jnp.bfloat16):
    """Pad every feature dim to a multiple of 128 lanes and pre-cast once.

    params: list of (W(in,out) f32, b(1,out) f32).
    Returns (prepared, out_features) where prepared is a list of
    (W_pad bf16 (in_pad,out_pad), b_pad f32 (1,out_pad)).
    """
    n = len(params)
    prepared = []
    for l, (w, b) in enumerate(params):
        fi, fo = w.shape
        fi_p, fo_p = _round_up(fi, _LANE), _round_up(fo, _LANE)
        w_p = jnp.zeros((fi_p, fo_p), compute_dtype)
        w_p = w_p.at[:fi, :fo].set(w.astype(compute_dtype))
        if l == n - 1:
            # Large-negative (finite) padding so padded softmax columns vanish.
            b_p = jnp.full((1, fo_p), _NEG_BIAS, jnp.float32)
        else:
            # Zero padding is exact: ReLU keeps padded activations at 0.
            b_p = jnp.zeros((1, fo_p), jnp.float32)
        b_p = b_p.at[:, :fo].set(b.astype(jnp.float32))
        prepared.append((w_p, b_p))
    out_features = params[-1][0].shape[1]
    return prepared, out_features


# ----------------------------------------------------------------------------
# Forward wrapper
# ----------------------------------------------------------------------------
def mlp_forward(x, prepared, out_features, *, batch_block=2048,
                compute_dtype=jnp.bfloat16, out_dtype=jnp.float32):
    """x: (B, d_in) f32.  prepared: output of prepare_mlp_params."""
    n_layers = len(prepared)
    B, d_in = x.shape
    d_in_pad = prepared[0][0].shape[0]
    d_out_pad = prepared[-1][0].shape[1]
    assert d_in <= d_in_pad and out_features <= d_out_pad

    widths = [d_in_pad] + [w.shape[1] for (w, _) in prepared]
    weight_bytes = int(sum(w.size * w.dtype.itemsize + b.size * b.dtype.itemsize
                           for (w, b) in prepared))
    out_size = jnp.dtype(out_dtype).itemsize

    # --- VMEM-budgeted batch tile (multiple of 16 for bf16 sublane packing) --
    vmem_limit = 48 * 2**20            # explicit scoped limit (safe on v5e..v7x)
    vmem_budget = 44 * 2**20           # tile budget with headroom under the limit
    max_w = max(widths)
    per_row = (2 * d_in_pad * 4            # double-buffered f32 x tile
               + 2 * d_out_pad * out_size  # double-buffered out tile
               + 3 * max_w * 4)            # f32/bf16 activation live set (est.)
    bb_cap = max(_SUBLANE,
                 ((vmem_budget - weight_bytes) // per_row) // _SUBLANE * _SUBLANE)

    b16 = _round_up(B, _SUBLANE)
    bb = min(_round_up(min(batch_block, b16), _SUBLANE), bb_cap)
    # Only force >= 2 "parallel" grid steps on multi-TensorCore chips (v7x);
    # on v5e/v6e the grid is a serial loop and splitting only adds fixed cost.
    if _is_multi_tc_chip() and b16 >= 2 * _SUBLANE and pl.cdiv(b16, bb) < 2:
        bb = _round_up(pl.cdiv(b16, 2), _SUBLANE)
    b_pad = _round_up(b16, bb)
    grid = b_pad // bb

    # --- pad x (batch + input features); keep f32, kernel casts to bf16 ------
    x_p = x
    if b_pad != B or d_in_pad != d_in:
        x_p = jnp.pad(x, ((0, b_pad - B), (0, d_in_pad - d_in)))

    # --- specs: x/out tiled over batch; params whole-array resident in VMEM --
    in_specs = [pl.BlockSpec((bb, d_in_pad), lambda i: (i, 0))]
    vmem_whole = pl.BlockSpec(memory_space=pltpu.MemorySpace.VMEM)
    flat_params = []
    for (w, b) in prepared:
        flat_params += [w, b]
        in_specs += [vmem_whole, vmem_whole]
    out_spec = pl.BlockSpec((bb, d_out_pad), lambda i: (i, 0))   # lane-dense store

    # --- cost estimate (helps XLA schedule surrounding pad/slice ops) --------
    flops = 2 * b_pad * sum(fi * fo for fi, fo in zip(widths[:-1], widths[1:]))
    cost = pl.CostEstimate(
        flops=int(flops),
        transcendentals=int(b_pad * d_out_pad),
        bytes_accessed=int(x_p.size * 4 + weight_bytes + b_pad * d_out_pad * out_size),
    )

    kernel = functools.partial(_mlp_kernel, n_layers, compute_dtype)
    out = pl.pallas_call(
        kernel,
        out_shape=jax.ShapeDtypeStruct((b_pad, d_out_pad), out_dtype),
        grid_spec=pltpu.PrefetchScalarGridSpec(
            num_scalar_prefetch=0,
            grid=(grid,),
            in_specs=in_specs,
            out_specs=out_spec,
        ),
        compiler_params=pltpu.CompilerParams(
            dimension_semantics=("parallel",),
            vmem_limit_bytes=vmem_limit,
        ),
        cost_estimate=cost,
    )(x_p, *flat_params)
    return out[:B, :out_features]


# ----------------------------------------------------------------------------
# Init + reference
# ----------------------------------------------------------------------------
def init_mlp_params(key, layers):
    """Mirror nn.Linear default init U(-1/sqrt(in), 1/sqrt(in)).

    Returns list of (W, b) with W shaped (in, out) and b shaped (1, out)."""
    params = []
    for i in range(len(layers) - 1):
        fan_in, fan_out = layers[i], layers[i + 1]
        key, kw, kb = jax.random.split(key, 3)
        bound = 1.0 / jnp.sqrt(fan_in)
        w = jax.random.uniform(kw, (fan_in, fan_out), jnp.float32, -bound, bound)
        b = jax.random.uniform(kb, (1, fan_out), jnp.float32, -bound, bound)
        params.append((w, b))
    return params


def mlp_reference(x, params):
    """Pure-JAX f32 reference matching the PyTorch module semantics."""
    h = x
    for l, (w, b) in enumerate(params):
        h = h @ w + b
        if l != len(params) - 1:
            h = jnp.maximum(h, 0.0)
        else:
            h = jax.nn.softmax(h, axis=1)
    return h


if __name__ == "__main__":
    layers = [32, 64, 64, 16]          # MLP([32, 64, 64, 16])
    batch = 20                         # not a multiple of 16 -> exercises padding

    key = jax.random.PRNGKey(0)
    key, kx = jax.random.split(key)
    x = jax.random.normal(kx, (batch, layers[0]), jnp.float32)
    params = init_mlp_params(key, layers)

    # One-time parameter preparation (lane padding + bf16 pre-cast).
    prepared, out_features = prepare_mlp_params(params)

    out = mlp_forward(x, prepared, out_features)
    out = jax.block_until_ready(out)

    ref = mlp_reference(x, params)     # f32 reference
    assert out.shape == (batch, layers[-1]), "bad output shape"
    # bf16 operands (f32 accumulation) vs full-f32 reference: loosened tolerance.
    assert jnp.allclose(out, ref, atol=2e-2, rtol=2e-2), "mismatch vs reference"
    assert jnp.allclose(jnp.sum(out, axis=1), 1.0, atol=1e-4), "softmax rows must sum to 1"

    print("KERNEL_OK")
</pallas_src>

<mosaic_0001>
module attributes {stable_mosaic.version = 11 : i64} {
  func.func @_mlp_kernel(%arg0: i32, %arg1: memref<32x128xf32, #tpu.memory_space<vmem>>, %arg2: memref<128x128xbf16, #tpu.memory_space<vmem>>, %arg3: memref<1x128xf32, #tpu.memory_space<vmem>>, %arg4: memref<128x128xbf16, #tpu.memory_space<vmem>>, %arg5: memref<1x128xf32, #tpu.memory_space<vmem>>, %arg6: memref<128x128xbf16, #tpu.memory_space<vmem>>, %arg7: memref<1x128xf32, #tpu.memory_space<vmem>>, %arg8: memref<32x128xf32, #tpu.memory_space<vmem>>) attributes {dimension_semantics = [#tpu.dimension_semantics<parallel>], iteration_bounds = array<i64: 1>, scalar_prefetch = 0 : i64, scratch_operands = 0 : i64, tpu.core_type = #tpu.core_type<tc>, window_params = [{transform_indices = @transform_0, window_bounds = array<i64: 32, 128>}, {pipeline_mode = #tpu.pipeline_mode<synchronous>, transform_indices = @transform_1, window_bounds = array<i64: 128, 128>}, {pipeline_mode = #tpu.pipeline_mode<synchronous>, transform_indices = @transform_2, window_bounds = array<i64: 1, 128>}, {pipeline_mode = #tpu.pipeline_mode<synchronous>, transform_indices = @transform_3, window_bounds = array<i64: 128, 128>}, {pipeline_mode = #tpu.pipeline_mode<synchronous>, transform_indices = @transform_4, window_bounds = array<i64: 1, 128>}, {pipeline_mode = #tpu.pipeline_mode<synchronous>, transform_indices = @transform_5, window_bounds = array<i64: 128, 128>}, {pipeline_mode = #tpu.pipeline_mode<synchronous>, transform_indices = @transform_6, window_bounds = array<i64: 1, 128>}, {transform_indices = @transform_7, window_bounds = array<i64: 32, 128>}]} {
    %c0 = arith.constant 0 : index
    %c0_0 = arith.constant 0 : index
    %0 = vector.load %arg1[%c0, %c0_0] : memref<32x128xf32, #tpu.memory_space<vmem>>, vector<32x128xf32>
    %1 = arith.truncf %0 : vector<32x128xf32> to vector<32x128xbf16>
    %c0_1 = arith.constant 0 : index
    %c0_2 = arith.constant 0 : index
    %2 = vector.load %arg2[%c0_1, %c0_2] : memref<128x128xbf16, #tpu.memory_space<vmem>>, vector<128x128xbf16>
    %c0_3 = arith.constant 0 : index
    %c0_4 = arith.constant 0 : index
    %3 = vector.load %arg3[%c0_3, %c0_4] : memref<1x128xf32, #tpu.memory_space<vmem>>, vector<1x128xf32>
    %cst = arith.constant dense<0.000000e+00> : vector<32x128xf32>
    %4 = tpu.matmul %1, %2, %cst {dimension_numbers = #tpu.dot_dimension_numbers<[1], [0], [0], [1], [0, 0, 1, 1], [], []>} : vector<32x128xbf16>, vector<128x128xbf16>, vector<32x128xf32> -> vector<32x128xf32>
    %5 = vector.broadcast %3 : vector<1x128xf32> to vector<32x128xf32>
    %6 = arith.addf %4, %5 : vector<32x128xf32>
    %cst_5 = arith.constant 0.000000e+00 : f32
    %7 = vector.broadcast %cst_5 : f32 to vector<32x128xf32>
    %8 = arith.maximumf %6, %7 : vector<32x128xf32>
    %9 = arith.truncf %8 : vector<32x128xf32> to vector<32x128xbf16>
    %c0_6 = arith.constant 0 : index
    %c0_7 = arith.constant 0 : index
    %10 = vector.load %arg4[%c0_6, %c0_7] : memref<128x128xbf16, #tpu.memory_space<vmem>>, vector<128x128xbf16>
    %c0_8 = arith.constant 0 : index
    %c0_9 = arith.constant 0 : index
    %11 = vector.load %arg5[%c0_8, %c0_9] : memref<1x128xf32, #tpu.memory_space<vmem>>, vector<1x128xf32>
    %cst_10 = arith.constant dense<0.000000e+00> : vector<32x128xf32>
    %12 = tpu.matmul %9, %10, %cst_10 {dimension_numbers = #tpu.dot_dimension_numbers<[1], [0], [0], [1], [0, 0, 1, 1], [], []>} : vector<32x128xbf16>, vector<128x128xbf16>, vector<32x128xf32> -> vector<32x128xf32>
    %13 = vector.broadcast %11 : vector<1x128xf32> to vector<32x128xf32>
    %14 = arith.addf %12, %13 : vector<32x128xf32>
    %cst_11 = arith.constant 0.000000e+00 : f32
    %15 = vector.broadcast %cst_11 : f32 to vector<32x128xf32>
    %16 = arith.maximumf %14, %15 : vector<32x128xf32>
    %17 = arith.truncf %16 : vector<32x128xf32> to vector<32x128xbf16>
    %c0_12 = arith.constant 0 : index
    %c0_13 = arith.constant 0 : index
    %18 = vector.load %arg6[%c0_12, %c0_13] : memref<128x128xbf16, #tpu.memory_space<vmem>>, vector<128x128xbf16>
    %c0_14 = arith.constant 0 : index
    %c0_15 = arith.constant 0 : index
    %19 = vector.load %arg7[%c0_14, %c0_15] : memref<1x128xf32, #tpu.memory_space<vmem>>, vector<1x128xf32>
    %cst_16 = arith.constant dense<0.000000e+00> : vector<32x128xf32>
    %20 = tpu.matmul %17, %18, %cst_16 {dimension_numbers = #tpu.dot_dimension_numbers<[1], [0], [0], [1], [0, 0, 1, 1], [], []>} : vector<32x128xbf16>, vector<128x128xbf16>, vector<32x128xf32> -> vector<32x128xf32>
    %21 = vector.broadcast %19 : vector<1x128xf32> to vector<32x128xf32>
    %22 = arith.addf %20, %21 : vector<32x128xf32>
    %cst_17 = arith.constant dense<0xFF800000> : vector<32xf32>
    %23 = vector.multi_reduction <maximumf>, %22, %cst_17 [1] : vector<32x128xf32> to vector<32xf32>
    %24 = vector.shape_cast %23 : vector<32xf32> to vector<32x1xf32>
    %25 = vector.broadcast %24 : vector<32x1xf32> to vector<32x128xf32>
    %26 = arith.subf %22, %25 : vector<32x128xf32>
    %27 = math.exp %26 : vector<32x128xf32>
    %cst_18 = arith.constant dense<0.000000e+00> : vector<32xf32>
    %28 = vector.multi_reduction <add>, %27, %cst_18 [1] : vector<32x128xf32> to vector<32xf32>
    %29 = vector.shape_cast %28 : vector<32xf32> to vector<32x1xf32>
    %30 = tpu.reciprocal %29 {approx = true} : vector<32x1xf32> -> vector<32x1xf32>
    %31 = arith.mulf %29, %30 : vector<32x1xf32>
    %cst_19 = arith.constant 2.000000e+00 : f32
    %32 = vector.broadcast %cst_19 : f32 to vector<32x1xf32>
    %33 = arith.subf %32, %31 : vector<32x1xf32>
    %34 = arith.mulf %30, %33 : vector<32x1xf32>
    %35 = vector.broadcast %34 : vector<32x1xf32> to vector<32x128xf32>
    %36 = arith.mulf %27, %35 : vector<32x128xf32>
    %c0_20 = arith.constant 0 : index
    %c0_21 = arith.constant 0 : index
    %37 = vector.load %arg8[%c0_20, %c0_21] : memref<32x128xf32, #tpu.memory_space<vmem>>, vector<32x128xf32>
    tpu.vector_store %arg8[%c0_20, %c0_21], %36 {strides = array<i32>} : memref<32x128xf32, #tpu.memory_space<vmem>>, vector<32x128xf32>,
    return
  }
  func.func @transform_0(%arg0: i32) -> (i32, i32) {
    %c0_i32 = arith.constant 0 : i32
    %c0_i32_0 = arith.constant 0 : i32
    return %arg0, %c0_i32 : i32, i32
  }
  func.func @transform_1(%arg0: i32) -> (i32, i32) {
    %c0_i32 = arith.constant 0 : i32
    %c0_i32_0 = arith.constant 0 : i32
    %c0_i32_1 = arith.constant 0 : i32
    return %c0_i32, %c0_i32_0 : i32, i32
  }
  func.func @transform_2(%arg0: i32) -> (i32, i32) {
    %c0_i32 = arith.constant 0 : i32
    %c0_i32_0 = arith.constant 0 : i32
    %c0_i32_1 = arith.constant 0 : i32
    return %c0_i32, %c0_i32_0 : i32, i32
  }
  func.func @transform_3(%arg0: i32) -> (i32, i32) {
    %c0_i32 = arith.constant 0 : i32
    %c0_i32_0 = arith.constant 0 : i32
    %c0_i32_1 = arith.constant 0 : i32
    return %c0_i32, %c0_i32_0 : i32, i32
  }
  func.func @transform_4(%arg0: i32) -> (i32, i32) {
    %c0_i32 = arith.constant 0 : i32
    %c0_i32_0 = arith.constant 0 : i32
    %c0_i32_1 = arith.constant 0 : i32
    return %c0_i32, %c0_i32_0 : i32, i32
  }
  func.func @transform_5(%arg0: i32) -> (i32, i32) {
    %c0_i32 = arith.constant 0 : i32
    %c0_i32_0 = arith.constant 0 : i32
    %c0_i32_1 = arith.constant 0 : i32
    return %c0_i32, %c0_i32_0 : i32, i32
  }
  func.func @transform_6(%arg0: i32) -> (i32, i32) {
    %c0_i32 = arith.constant 0 : i32
    %c0_i32_0 = arith.constant 0 : i32
    %c0_i32_1 = arith.constant 0 : i32
    return %c0_i32, %c0_i32_0 : i32, i32
  }
  func.func @transform_7(%arg0: i32) -> (i32, i32) {
    %c0_i32 = arith.constant 0 : i32
    %c0_i32_0 = arith.constant 0 : i32
    return %arg0, %c0_i32 : i32, i32
  }
}

</mosaic_0001>

<bundles_post_ra>
// kernel: tpu_custom_call.1
= control target key start
LH: loop header
LB: loop body
LE: loop exit
PB: predicated region body
PF: predicated region fallthrough
CT: control target
= control target key end

     0   :  { %12 = vsyncpa [#allocation3], 0  ;;  %s805_s0 = inlined_call_operand.hbm [shape: f32[32,128], index: 0, kind: input, shape index: {}]   ;;  %s806_s1 = inlined_call_operand.hbm [shape: bf16[128,128], index: 1, kind: input, shape index: {}]   ;;  %s807_s2 = inlined_call_operand.vmem [shape: f32[1,128], index: 2, kind: input, shape index: {}]   ;;  %s808_s3 = inlined_call_operand.hbm [shape: bf16[128,128], index: 3, kind: input, shape index: {}]   ;;  %s809_s4 = inlined_call_operand.vmem [shape: f32[1,128], index: 4, kind: input, shape index: {}]   ;;  %s810_s5 = inlined_call_operand.hbm [shape: bf16[128,128], index: 5, kind: input, shape index: {}]   ;;  %s811_s6 = inlined_call_operand.vmem [shape: f32[1,128], index: 6, kind: input, shape index: {}]   ;;  %s812_s7 = inlined_call_operand.hbm [shape: f32[32,128], index: 7, kind: output, shape index: {}]  }
   0x1   :  { %13 = vsyncpa [#allocation6], 0 }
   0x2   :  { %14 = vsyncpa [#allocation9], 0  ;;  %s33_s26 = sshll.u32 %s806_s1, 4  ;;  %s34_s26 = int_to_ptr.hbm [resolvable:$true] %s33_s26 }
   0x3   :  { %15 = vsyncpa [#allocation4], 0  ;;  %s726_s27 = smov [#allocation5]   ;;  %s20_s8 = sshll.u32 %s805_s0, 4  ;;  %s21_s8 = int_to_ptr.hbm [resolvable:$true] %s20_s8 }
   0x4   :  { %s35_s28 = sshll.u32 %s726_s27, 4  ;;  %s727_s9 = smov 64   ;;  %s36_s28 = int_to_ptr.vmem [resolvable:$true] %s35_s28 }
   0x5   :  { %s728_s10 = smov 4   ;;  %s729_s11 = smov [#allocation2]  }
   0x6   :  { %41 = dma.hbm_to_vmem [thread:$0]  %s34_s26, 1024, %s36_s28, [#allocation6], %s727_s9, %s727_s9, %s728_s10  }
   0x7   :  { %s22_s12 = sshll.u32 %s729_s11, 4  ;;  %s730_s13 = smov 128   ;;  %s23_s12 = int_to_ptr.vmem [resolvable:$true] %s22_s12 }
   0x8   :  { %s731_s14 = smov 8   ;;  %s48_s16 = sshll.u32 %s808_s3, 4  ;;  %s49_s16 = int_to_ptr.hbm [resolvable:$true] %s48_s16 }
   0x9   :  { %28 = dma.hbm_to_vmem [thread:$0]  %s21_s8, 512, %s23_s12, [#allocation3], %s730_s13, %s730_s13, %s731_s14  }
   0xa   :  { %s732_s17 = smov [#allocation7]   ;;  %s63_s20 = sshll.u32 %s810_s5, 4  ;;  %s64_s20 = int_to_ptr.hbm [resolvable:$true] %s63_s20 }
   0xb   :  { %s50_s0 = sshll.u32 %s732_s17, 4  ;;  %s733_s21 = smov [#allocation8]   ;;  %s51_s0 = int_to_ptr.vmem [resolvable:$true] %s50_s0 }
   0xc   :  { %56 = dma.hbm_to_vmem [thread:$0]  %s49_s16, 1024, %s51_s0, [#allocation6], %s727_s9, %s727_s9, %s728_s10  }
   0xd   :  { %s65_s22 = sshll.u32 %s733_s21, 4  ;;  %s66_s22 = int_to_ptr.vmem [resolvable:$true] %s65_s22 }
   0xe   :  { %71 = dma.hbm_to_vmem [thread:$0]  %s64_s20, 1024, %s66_s22, [#allocation9], %s727_s9, %s727_s9, %s728_s10  }
   0xf   :  { %718 = dma.done.wait [#allocation3], 512  }
  0x10   :  { %719 = vsyncadd [#allocation3], 4294966784 }
  0x11   :  { %720 = dma.done.wait [#allocation6], 2048  }
  0x12   :  { %721 = vsyncadd [#allocation6], 4294965248 }
  0x13   :  { %722 = dma.done.wait [#allocation9], 1024  }
  0x14   :  { %723 = vsyncadd [#allocation9], 4294966272  ;;  %v545_v0 = vld [vmem:[#allocation5 + $0x38] sm:$0xff]  ;;  %v544_v1 = vld [vmem:[#allocation5 + $0x30] sm:$0xff]  ;;  %s427_s28 = sshll.u32 %s812_s7, 4  ;;  %s428_s28 = int_to_ptr.hbm [resolvable:$true] %s427_s28 }
  0x15   :  { %164 = vmatpush.bf16.msra.mxu0 %v545_v0  ;;  %562 = vmatpush.bf16.msra.mxu3 %v545_v0  ;;  %v553_v2 = vld [vmem:[#allocation7 + $0x38] sm:$0xff]  ;;  %v543_v3 = vld [vmem:[#allocation5 + $0x28] sm:$0xff]  ;;  %v552_v4 = vld [vmem:[#allocation7 + $0x30] sm:$0xff] }
  0x16   :  { %257 = vmatpush.bf16.msra.mxu1 %v553_v2  ;;  %v542_v5 = vld [vmem:[#allocation5 + $0x20] sm:$0xff]  ;;  %v551_v6 = vld [vmem:[#allocation7 + $0x28] sm:$0xff]  ;;  %v541_v7 = vld [vmem:[#allocation5 + $0x18] sm:$0xff] }
  0x17   :  { %v550_v8 = vld [vmem:[#allocation7 + $0x20] sm:$0xff]  ;;  %v540_v9 = vld [vmem:[#allocation5 + $0x10] sm:$0xff]  ;;  %v539_v10 = vld [vmem:[#allocation5 + $0x8] sm:$0xff] }
  0x18   :  { %v538_v11 = vld [vmem:[#allocation5] sm:$0xff]  ;;  %v91_v13 = vld [vmem:[#allocation2 + $0x8] sm:$0xff]  ;;  %v92_v14 = vld [vmem:[#allocation2 + $0x10] sm:$0xff] }
  0x19   :  { %165 = vmatpush.bf16.msra.mxu0 %v544_v1  ;;  %563 = vmatpush.bf16.msra.mxu3 %v544_v1  ;;  %v90_v12 = vld [vmem:[#allocation2] sm:$0xff]  ;;  %v93_v15 = vld [vmem:[#allocation2 + $0x18] sm:$0xff]  ;;  %v548_v19 = vld [vmem:[#allocation7 + $0x10] sm:$0xff] }
  0x1a   :  { %258 = vmatpush.bf16.msra.mxu1 %v552_v4  ;;  %v94_v16 = vpack.c.bf16 %v91_v13, %v90_v12  ;;  %v95_v17 = vpack.c.bf16 %v93_v15, %v92_v14  ;;  %v549_v18 = vld [vmem:[#allocation7 + $0x18] sm:$0xff]  ;;  %v547_v20 = vld [vmem:[#allocation7 + $0x8] sm:$0xff]  ;;  %v546_v21 = vld [vmem:[#allocation7] sm:$0xff] }
  0x1b   :  { %v561_v22 = vld [vmem:[#allocation8 + $0x38] sm:$0xff]  ;;  %v560_v24 = vld [vmem:[#allocation8 + $0x30] sm:$0xff]  ;;  %v579_v25 = vld [vmem:[%s807_s2] ss:$0 sm:$0xff] }
  0x1c   :  { %350 = vmatpush.bf16.msra.mxu2 %v561_v22  ;;  %v559_v26 = vld [vmem:[#allocation8 + $0x28] sm:$0xff]  ;;  %v558_v31 = vld [vmem:[#allocation8 + $0x20] sm:$0xff]  ;;  %v557_v41 = vld [vmem:[#allocation8 + $0x18] sm:$0xff] }
  0x1d   :  { %166 = vmatpush.bf16.msra.mxu0 %v543_v3  ;;  %564 = vmatpush.bf16.msra.mxu3 %v543_v3  ;;  %v556_v42 = vld [vmem:[#allocation8 + $0x10] sm:$0xff]  ;;  %v555_v43 = vld [vmem:[#allocation8 + $0x8] sm:$0xff]  ;;  %v554_v44 = vld [vmem:[#allocation8] sm:$0xff] }
  0x1e   :  { %259 = vmatpush.bf16.msra.mxu1 %v551_v6  ;;  %v580_v46 = vld [vmem:[%s809_s4] ss:$0 sm:$0xff]  ;;  %s734_s4 = smov [#allocation10]  }
  0x1f   :  { %v581_v60 = vld [vmem:[%s811_s6] ss:$0 sm:$0xff]  ;;  %s425_s6 = sshll.u32 %s734_s4, 4  ;;  %s426_s6 = int_to_ptr.vmem [resolvable:$true] %s425_s6 }
  0x20   :  { %351 = vmatpush.bf16.msra.mxu2 %v560_v24 }
  0x21   :  { %167 = vmatpush.bf16.msra.mxu0 %v542_v5  ;;  %565 = vmatpush.bf16.msra.mxu3 %v542_v5 }
  0x22   :  { %260 = vmatpush.bf16.msra.mxu1 %v550_v8 }
  0x24   :  { %352 = vmatpush.bf16.msra.mxu2 %v559_v26 }
  0x25   :  { %168 = vmatpush.bf16.msra.mxu0 %v541_v7  ;;  %566 = vmatpush.bf16.msra.mxu3 %v541_v7 }
  0x26   :  { %261 = vmatpush.bf16.msra.mxu1 %v549_v18 }
  0x28   :  { %353 = vmatpush.bf16.msra.mxu2 %v558_v31 }
  0x29   :  { %169 = vmatpush.bf16.msra.mxu0 %v540_v9  ;;  %567 = vmatpush.bf16.msra.mxu3 %v540_v9 }
  0x2a   :  { %262 = vmatpush.bf16.msra.mxu1 %v548_v19 }
  0x2c   :  { %354 = vmatpush.bf16.msra.mxu2 %v557_v41 }
  0x2d   :  { %170 = vmatpush.bf16.msra.mxu0 %v539_v10  ;;  %568 = vmatpush.bf16.msra.mxu3 %v539_v10 }
  0x2e   :  { %263 = vmatpush.bf16.msra.mxu1 %v547_v20 }
  0x30   :  { %355 = vmatpush.bf16.msra.mxu2 %v556_v42 }
  0x31   :  { %171 = vmatpush.bf16.msra.mxu0 %v538_v11  ;;  %569 = vmatpush.bf16.msra.mxu3 %v538_v11 }
  0x32   :  { %264 = vmatpush.bf16.msra.mxu1 %v546_v21 }
  0x34   :  { %172 = vmatmul.bf16.vlgmr.msra.gmra.mxu0 %v94_v16  ;;  %177 = vmatmul.bf16.vlgmr.msra.gmra.mxu3 %v95_v17 }
  0x35   :  { %356 = vmatpush.bf16.msra.mxu2 %v555_v43 }
  0x39   :  { %357 = vmatpush.bf16.msra.mxu2 %v554_v44 }
  0xb1   :  { %v173_v23 = vpop.f32.mrf.mxu0 }
  0xb2   :  { %v174_v27 = vadd.f32 %v579_v25, %v173_v23 }
  0xb4   :  { %v183_v32 = vmax.f32 %v174_v27, 0.0 }
  0xb7   :  { %v178_v29 = vpop.f32.mrf.mxu3 }
  0xb8   :  { %v179_v36 = vadd.f32 %v579_v25, %v178_v29 }
  0xb9   :  { %v175_v28 = vpop.f32.mrf.mxu0 }
  0xba   :  { %v176_v30 = vadd.f32 %v579_v25, %v175_v28  ;;  %v185_v38 = vmax.f32 %v179_v36, 0.0 }
  0xbc   :  { %v184_v33 = vmax.f32 %v176_v30, 0.0 }
  0xbe   :  { %v187_v34 = vpack.c.bf16 %v184_v33, %v183_v32 }
  0xbf   :  { %v180_v35 = vpop.f32.mrf.mxu3 }
  0xc0   :  { %265 = vmatmul.bf16.vlgmr.msra.gmra.mxu1 %v187_v34  ;;  %v181_v37 = vadd.f32 %v579_v25, %v180_v35 }
  0xc2   :  { %v186_v39 = vmax.f32 %v181_v37, 0.0 }
  0xc4   :  { %v188_v40 = vpack.c.bf16 %v186_v39, %v185_v38 }
  0xd0   :  { %270 = vmatmul.bf16.gmra.mxu1 %v188_v40 }
 0x13d   :  { %v266_v45 = vpop.f32.mrf.mxu1 }
 0x13e   :  { %v267_v47 = vadd.f32 %v580_v46, %v266_v45 }
 0x140   :  { %v276_v50 = vmax.f32 %v267_v47, 0.0 }
 0x145   :  { %v268_v48 = vpop.f32.mrf.mxu1 }
 0x146   :  { %v269_v49 = vadd.f32 %v580_v46, %v268_v48 }
 0x148   :  { %v277_v51 = vmax.f32 %v269_v49, 0.0 }
 0x14a   :  { %v280_v52 = vpack.c.bf16 %v277_v51, %v276_v50 }
 0x14c   :  { %358 = vmatmul.bf16.vlgmr.msra.gmra.mxu2 %v280_v52 }
 0x14d   :  { %v271_v53 = vpop.f32.mrf.mxu1 }
 0x14e   :  { %v272_v54 = vadd.f32 %v580_v46, %v271_v53 }
 0x150   :  { %v278_v57 = vmax.f32 %v272_v54, 0.0 }
 0x155   :  { %v273_v55 = vpop.f32.mrf.mxu1 }
 0x156   :  { %v274_v56 = vadd.f32 %v580_v46, %v273_v55 }
 0x158   :  { %v279_v58 = vmax.f32 %v274_v56, 0.0 }
 0x15a   :  { %v281_v59 = vpack.c.bf16 %v279_v58, %v278_v57 }
 0x15c   :  { %363 = vmatmul.bf16.gmra.mxu2 %v281_v59 }
 0x1cf   :  { %v359_v61 = vpop.f32.mrf.mxu2 }
 0x1d0   :  { %v360_v62 = vadd.f32 %v581_v60, %v359_v61 }
 0x1d2   :  { %369 = vmax.xlane.f32.xlu0 %v360_v62 }
 0x1d7   :  { %v361_v63 = vpop.f32.mrf.mxu2 }
 0x1d8   :  { %v362_v0 = vadd.f32 %v581_v60, %v361_v63 }
 0x1da   :  { %371 = vmax.xlane.f32.xlu0 %v362_v0 }
 0x1df   :  { %v364_v1 = vpop.f32.mrf.mxu2 }
 0x1e0   :  { %v365_v2 = vadd.f32 %v581_v60, %v364_v1 }
 0x1e2   :  { %373 = vmax.xlane.f32.xlu1 %v365_v2 }
 0x1e7   :  { %v366_v3 = vpop.f32.mrf.mxu2 }
 0x1e8   :  { %v367_v4 = vadd.f32 %v581_v60, %v366_v3 }
 0x1ea   :  { %375 = vmax.xlane.f32.xlu1 %v367_v4 }
 0x245   :  { %v370_v5 = vpop.xlane.xlu0 %369 }
 0x246   :  { %v377_v6 = vsub.f32 %v360_v62, %v370_v5 }
 0x248   :  { %v381_v7 = vmul.f32 1.442695, %v377_v6 }
 0x24a   :  { %582 = vpow2.f32 %v381_v7 }
 0x24d   :  { %v372_v8 = vpop.xlane.xlu0 %371 }
 0x24e   :  { %v378_v9 = vsub.f32 %v362_v0, %v372_v8 }
 0x250   :  { %v583_v10 = vpop.eup %582  ;;  %v383_v11 = vmul.f32 1.442695, %v378_v9 }
 0x251   :  { %389 = vadd.xlane.f32.xlu2 %v583_v10 }
 0x252   :  { %584 = vpow2.f32 %v383_v11 }
 0x255   :  { %v374_v12 = vpop.xlane.xlu1 %373 }
 0x256   :  { %v379_v13 = vsub.f32 %v365_v2, %v374_v12 }
 0x258   :  { %v585_v14 = vpop.eup %584  ;;  %v385_v15 = vmul.f32 1.442695, %v379_v13 }
 0x259   :  { %391 = vadd.xlane.f32.xlu2 %v585_v14 }
 0x25a   :  { %586 = vpow2.f32 %v385_v15 }
 0x25d   :  { %v376_v16 = vpop.xlane.xlu1 %375 }
 0x25e   :  { %v380_v17 = vsub.f32 %v367_v4, %v376_v16 }
 0x260   :  { %v587_v18 = vpop.eup %586  ;;  %v387_v19 = vmul.f32 1.442695, %v380_v17 }
 0x261   :  { %393 = vadd.xlane.f32.xlu0 %v587_v18 }
 0x262   :  { %588 = vpow2.f32 %v387_v19 }
 0x268   :  { %v589_v20 = vpop.eup %588 }
 0x269   :  { %395 = vadd.xlane.f32.xlu1 %v589_v20 }
 0x2c4   :  { %v390_v21 = vpop.xlane.xlu2 %389 }
 0x2c5   :  { %590 = vrcp.f32 %v390_v21 }
 0x2cb   :  { %v591_v22 = vpop.eup %590 }
 0x2cc   :  { %v401_v23 = vmul.f32 %v591_v22, %v390_v21  ;;  %v392_v24 = vpop.xlane.xlu2 %391 }
 0x2cd   :  { %592 = vrcp.f32 %v392_v24 }
 0x2ce   :  { %v405_v25 = vsub.f32 2.0, %v401_v23 }
 0x2d0   :  { %v409_v26 = vmul.f32 %v591_v22, %v405_v25 }
 0x2d2   :  { %v413_v27 = vmul.f32 %v583_v10, %v409_v26 }
 0x2d3   :  { %v593_v28 = vpop.eup %592 }
 0x2d4   :  { %417 = vst [vmem:[#allocation10] sm:$0xff] %v413_v27  ;;  %v402_v29 = vmul.f32 %v593_v28, %v392_v24  ;;  %v394_v30 = vpop.xlane.xlu0 %393 }
 0x2d5   :  { %594 = vrcp.f32 %v394_v30 }
 0x2d6   :  { %v406_v31 = vsub.f32 2.0, %v402_v29 }
 0x2d8   :  { %v410_v32 = vmul.f32 %v593_v28, %v406_v31 }
 0x2da   :  { %v414_v33 = vmul.f32 %v585_v14, %v410_v32 }
 0x2db   :  { %v595_v34 = vpop.eup %594 }
 0x2dc   :  { %418 = vst [vmem:[#allocation10 + $0x8] sm:$0xff] %v414_v33  ;;  %v403_v35 = vmul.f32 %v595_v34, %v394_v30  ;;  %v396_v36 = vpop.xlane.xlu1 %395 }
 0x2dd   :  { %596 = vrcp.f32 %v396_v36 }
 0x2de   :  { %v407_v37 = vsub.f32 2.0, %v403_v35 }
 0x2e0   :  { %v411_v38 = vmul.f32 %v595_v34, %v407_v37 }
 0x2e2   :  { %v415_v39 = vmul.f32 %v587_v18, %v411_v38 }
 0x2e3   :  { %v597_v40 = vpop.eup %596 }
 0x2e4   :  { %419 = vst [vmem:[#allocation10 + $0x10] sm:$0xff] %v415_v39  ;;  %v404_v41 = vmul.f32 %v597_v40, %v396_v36 }
 0x2e6   :  { %v408_v42 = vsub.f32 2.0, %v404_v41 }
 0x2e8   :  { %v412_v43 = vmul.f32 %v597_v40, %v408_v42 }
 0x2ea   :  { %v416_v44 = vmul.f32 %v589_v20, %v412_v43 }
 0x2ec   :  { %420 = vst [vmem:[#allocation10 + $0x18] sm:$0xff] %v416_v44 }
 0x2ed   :  { %433 = dma.vmem_to_hbm [thread:$0]  %s426_s6, 512, %s428_s28, [#allocation4], %s730_s13, %s730_s13, %s731_s14  }
 0x2ee   :  { %724 = dma.done.wait [#allocation4], 512  }
 0x2ef   :  { %725 = vsyncadd [#allocation4], 4294966784 }
 0x2f0   :  { %438 = vsyncpa [#allocation3], 1 }
 0x2f1   :  { %439 = vsyncpa [#allocation6], 1 }
 0x2f2   :  { %440 = vsyncpa [#allocation9], 1 }
 0x2f3   :  { %441 = vsyncpa [#allocation4], 1 }

</bundles_post_ra>
